<compile_context>
chip_gen: v5e
topology: v5e:2x2
jax: 0.10.0
libtpu: 0.0.40
codegen_flags: <defaults>
</compile_context>

<pallas_src>
import functools
import math

import jax
import jax.numpy as jnp
from jax import lax
from jax.experimental import pallas as pl
from jax.experimental.pallas import tpu as pltpu


def _round_up(x, m):
    return (x + m - 1) // m * m


def _label_smoothing_kernel(tgt_ref, logits_ref, out_ref, *,
                            confidence, smoothing, ignore_index, vocab,
                            batch, block_rows):
    x = logits_ref[...]                                   # (tb, V) native dtype
    tgt = tgt_ref[...]                                    # (tb, 1) int32
    tb, v = x.shape

    # Global row indices of this tile; rows >= batch belong to the ragged last tile
    # (their logits/targets are undefined partial-block reads and are selected away
    # at the very end — select, not multiply, so NaN/Inf cannot survive).
    row0 = pl.program_id(0) * block_rows
    rows = row0 + lax.broadcasted_iota(jnp.int32, (tb, 1), 0)
    row_ok = (rows < batch) & (tgt != jnp.int32(ignore_index))

    # Row-wise log-softmax statistics; exp() is the only per-element transcendental
    # and it rides the EUP slot.
    m = jnp.max(x, axis=-1, keepdims=True).astype(jnp.float32)       # (tb, 1)
    xm = x.astype(jnp.float32) - m                                    # (tb, V)
    lse = jnp.log(jnp.sum(jnp.exp(xm), axis=-1, keepdims=True))       # (tb, 1)

    # Single fused weighted reduce: w_j = conf at the target column, 0 at the
    # ignore_index column (when ignore_index >= 0), smoothing elsewhere.
    conf = jnp.float32(confidence)
    s = jnp.float32(smoothing)
    col = lax.broadcasted_iota(jnp.int32, (tb, v), 1)
    w = jnp.where(col == tgt, conf, s)
    if ignore_index >= 0:
        w = jnp.where(col == jnp.int32(ignore_index), jnp.float32(0.0), w)
    weighted = jnp.sum(xm * w, axis=-1, keepdims=True)                # sum_j w_j*xm_j

    # Compile-time constants of the smoothed target distribution.
    n_smooth = vocab - (2 if ignore_index >= 0 else 1)
    const_conf = confidence * math.log(confidence) if confidence > 0.0 else 0.0
    const_row = jnp.float32(const_conf + n_smooth * smoothing * math.log(smoothing))
    p_total = jnp.float32(confidence + n_smooth * smoothing)          # sum_j prob_j

    # KL per row = sum_j prob_j*(log prob_j - logp_j)
    #            = const_row + p_total*lse - sum_j prob_j*xm_j
    row = const_row + p_total * lse - weighted
    out_ref[...] = jnp.where(row_ok, row, jnp.float32(0.0))


def label_smoothing_loss(logits, target, label_smoothing, tgt_vocab_size,
                         ignore_index=-100, *, block_bytes=None):
    """Equivalent of LabelSmoothingLoss(label_smoothing, tgt_vocab_size, ignore_index)(logits, target)."""
    assert 0.0 < label_smoothing <= 1.0
    B, V = logits.shape
    assert V == tgt_vocab_size
    if ignore_index >= 0:
        assert ignore_index < V
    smoothing = label_smoothing / (tgt_vocab_size - 2)
    confidence = 1.0 - label_smoothing

    # --- hardware-aware tile / VMEM budget -------------------------------------
    try:
        info = pltpu.get_tpu_info()
        vmem_cap = int(getattr(info, "vmem_capacity_bytes", 64 * 1024 * 1024))
    except Exception:                       # CPU interpret / old jax: be conservative
        vmem_cap = 64 * 1024 * 1024
    vmem_limit = int(min(96 * 1024 * 1024, (vmem_cap * 3) // 4))   # 96 MiB v5e/v6e, 48 MiB v7x
    if block_bytes is None:
        # ~8 MiB blocks on 128 MiB parts, ~5 MiB on v7x; double-buffering plus the
        # in-kernel f32 temporaries stay comfortably inside vmem_limit.
        block_bytes = max(2 * 1024 * 1024, min(8 * 1024 * 1024, vmem_cap // 12))

    itemsize = jnp.dtype(logits.dtype).itemsize      # bf16 inputs stay bf16 on the wire
    row_bytes = V * itemsize

    orig_B = B
    tgt = target.astype(jnp.int32)
    if B < 8:
        # Tiny batch: pad by < 8 rows (negligible copy); padded rows are masked in-kernel.
        logits = jnp.pad(logits, ((0, 8 - B), (0, 0)))
        tgt = jnp.pad(tgt, (0, 8 - B))
        B = 8

    # Rows per tile: fill the block budget, keep >= ~4 grid steps when the batch
    # permits (megacore), and never let the block's sublane dim exceed the array.
    tb = max(8, (block_bytes // row_bytes) // 8 * 8)
    tb = min(tb, max(8, _round_up(pl.cdiv(B, 4), 8)))
    tb = min(tb, (B // 8) * 8)
    grid = pl.cdiv(B, tb)

    tgt2 = tgt.reshape(B, 1)

    kernel = functools.partial(
        _label_smoothing_kernel, confidence=confidence, smoothing=smoothing,
        ignore_index=ignore_index, vocab=V, batch=orig_B, block_rows=tb)

    per_row = pl.pallas_call(
        kernel,
        out_shape=jax.ShapeDtypeStruct((B, 1), jnp.float32),
        grid_spec=pltpu.PrefetchScalarGridSpec(
            num_scalar_prefetch=0,
            grid=(grid,),
            in_specs=[
                pl.BlockSpec((tb, 1), lambda i: (i, 0)),   # target column (tiny)
                pl.BlockSpec((tb, V), lambda i: (i, 0)),   # logits tile (native dtype)
            ],
            out_specs=pl.BlockSpec((tb, 1), lambda i: (i, 0)),
        ),
        compiler_params=pltpu.CompilerParams(
            dimension_semantics=("parallel",),
            vmem_limit_bytes=vmem_limit),
    )(tgt2, logits)

    # Ragged / ignored / padded rows are exactly zero, so a plain sum matches
    # reduction='sum'.
    return jnp.sum(per_row)


def _reference_loss(logits, target, label_smoothing, tgt_vocab_size, ignore_index):
    """Direct translation of the PyTorch forward (prob tensor + masked kl_div sum)."""
    smoothing_value = label_smoothing / (tgt_vocab_size - 2)
    one_hot = jnp.full((tgt_vocab_size,), smoothing_value, dtype=jnp.float32)
    if ignore_index >= 0:
        one_hot = one_hot.at[ignore_index].set(0.0)
    confidence = 1.0 - label_smoothing
    logits = logits.astype(jnp.float32)
    logp = jax.nn.log_softmax(logits, axis=1)
    _, V = logits.shape
    col = jnp.arange(V, dtype=jnp.int32)[None, :]
    tgt = target.astype(jnp.int32)[:, None]
    prob = jnp.where(col == tgt, confidence, one_hot[None, :])
    prob = jnp.where(tgt == ignore_index, 0.0, prob)
    safe = jnp.where(prob > 0, prob, 1.0)
    return jnp.sum(jnp.where(prob > 0, prob * (jnp.log(safe) - logp), 0.0))


if __name__ == "__main__":
    label_smoothing = 0.1
    B, V = 16, 128
    ignore_index = 0          # e.g. padding token index, exercises both masks

    key = jax.random.PRNGKey(0)
    k_logits, k_tgt, k_logits2, k_tgt2 = jax.random.split(key, 4)
    logits = jax.random.normal(k_logits, (B, V), dtype=jnp.float32)
    target = jax.random.randint(k_tgt, (B,), 0, V, dtype=jnp.int32)
    target = target.at[3].set(ignore_index).at[11].set(ignore_index)

    loss = label_smoothing_loss(logits, target, label_smoothing, V, ignore_index)
    loss = jax.block_until_ready(loss)
    ref = _reference_loss(logits, target, label_smoothing, V, ignore_index)
    assert jnp.allclose(loss, ref, rtol=1e-5, atol=1e-4), (loss, ref)

    # Second config: default ignore_index=-100 and a batch that isn't tile-aligned
    # (exercises the ragged last tile; no logits padding happens).
    B2 = 10
    logits2 = jax.random.normal(k_logits2, (B2, V), dtype=jnp.float32)
    target2 = jax.random.randint(k_tgt2, (B2,), 0, V, dtype=jnp.int32)
    loss2 = label_smoothing_loss(logits2, target2, label_smoothing, V, -100)
    loss2 = jax.block_until_ready(loss2)
    ref2 = _reference_loss(logits2, target2, label_smoothing, V, -100)
    assert jnp.allclose(loss2, ref2, rtol=1e-5, atol=1e-4), (loss2, ref2)

    # Third config: tiny batch (< 8 rows) falls back to a single padded tile.
    B3 = 5
    logits3 = jax.random.normal(k_logits, (B3, V), dtype=jnp.float32)
    target3 = jax.random.randint(k_tgt, (B3,), 0, V, dtype=jnp.int32)
    loss3 = label_smoothing_loss(logits3, target3, label_smoothing, V, -100)
    loss3 = jax.block_until_ready(loss3)
    ref3 = _reference_loss(logits3, target3, label_smoothing, V, -100)
    assert jnp.allclose(loss3, ref3, rtol=1e-5, atol=1e-4), (loss3, ref3)

    print("KERNEL_OK")
</pallas_src>

<mosaic_0001>
module attributes {stable_mosaic.version = 11 : i64} {
  func.func @_label_smoothing_kernel(%arg0: i32, %arg1: memref<8x1xi32, #tpu.memory_space<vmem>>, %arg2: memref<8x128xf32, #tpu.memory_space<vmem>>, %arg3: memref<8x1xf32, #tpu.memory_space<vmem>>) attributes {dimension_semantics = [#tpu.dimension_semantics<parallel>], iteration_bounds = array<i64: 2>, scalar_prefetch = 0 : i64, scratch_operands = 0 : i64, tpu.core_type = #tpu.core_type<tc>, window_params = [{transform_indices = @transform_0, window_bounds = array<i64: 8, 1>}, {transform_indices = @transform_1, window_bounds = array<i64: 8, 128>}, {transform_indices = @transform_2, window_bounds = array<i64: 8, 1>}]} {
    %c0 = arith.constant 0 : index
    %c0_0 = arith.constant 0 : index
    %0 = vector.load %arg2[%c0, %c0_0] : memref<8x128xf32, #tpu.memory_space<vmem>>, vector<8x128xf32>
    %c0_1 = arith.constant 0 : index
    %c0_2 = arith.constant 0 : index
    %1 = vector.load %arg1[%c0_1, %c0_2] : memref<8x1xi32, #tpu.memory_space<vmem>>, vector<8x1xi32>
    %c8_i32 = arith.constant 8 : i32
    %2 = arith.muli %arg0, %c8_i32 : i32
    %3 = tpu.iota {dimensions = array<i32: 0>} : vector<8x1xi32>
    %4 = vector.broadcast %2 : i32 to vector<8x1xi32>
    %5 = arith.addi %4, %3 : vector<8x1xi32>
    %c16_i32 = arith.constant 16 : i32
    %6 = vector.broadcast %c16_i32 : i32 to vector<8x1xi32>
    %7 = arith.cmpi slt, %5, %6 : vector<8x1xi32>
    %c0_i32 = arith.constant 0 : i32
    %8 = vector.broadcast %c0_i32 : i32 to vector<8x1xi32>
    %9 = arith.cmpi ne, %1, %8 : vector<8x1xi32>
    %10 = arith.andi %7, %9 : vector<8x1xi1>
    %cst = arith.constant dense<0xFF800000> : vector<8xf32>
    %11 = vector.multi_reduction <maximumf>, %0, %cst [1] : vector<8x128xf32> to vector<8xf32>
    %12 = vector.shape_cast %11 : vector<8xf32> to vector<8x1xf32>
    %13 = vector.broadcast %12 : vector<8x1xf32> to vector<8x128xf32>
    %14 = arith.subf %0, %13 : vector<8x128xf32>
    %15 = math.exp %14 : vector<8x128xf32>
    %cst_3 = arith.constant dense<0.000000e+00> : vector<8xf32>
    %16 = vector.multi_reduction <add>, %15, %cst_3 [1] : vector<8x128xf32> to vector<8xf32>
    %17 = vector.shape_cast %16 : vector<8xf32> to vector<8x1xf32>
    %18 = math.log %17 : vector<8x1xf32>
    %19 = tpu.iota {dimensions = array<i32: 1>} : vector<8x128xi32>
    %20 = vector.broadcast %1 : vector<8x1xi32> to vector<8x128xi32>
    %21 = arith.cmpi eq, %19, %20 : vector<8x128xi32>
    %cst_4 = arith.constant 0.899999976 : f32
    %cst_5 = arith.constant 7.93650805E-4 : f32
    %22 = vector.broadcast %cst_4 : f32 to vector<8x128xf32>
    %23 = vector.broadcast %cst_5 : f32 to vector<8x128xf32>
    %24 = arith.select %21, %22, %23 : vector<8x128xi1>, vector<8x128xf32>
    %c0_i32_6 = arith.constant 0 : i32
    %25 = vector.broadcast %c0_i32_6 : i32 to vector<8x128xi32>
    %26 = arith.cmpi eq, %19, %25 : vector<8x128xi32>
    %cst_7 = arith.constant 0.000000e+00 : f32
    %27 = vector.broadcast %cst_7 : f32 to vector<8x128xf32>
    %28 = arith.select %26, %27, %24 : vector<8x128xi1>, vector<8x128xf32>
    %29 = arith.mulf %14, %28 : vector<8x128xf32>
    %cst_8 = arith.constant dense<0.000000e+00> : vector<8xf32>
    %30 = vector.multi_reduction <add>, %29, %cst_8 [1] : vector<8x128xf32> to vector<8xf32>
    %31 = vector.shape_cast %30 : vector<8xf32> to vector<8x1xf32>
    %cst_9 = arith.constant 1.000000e+00 : f32
    %32 = vector.broadcast %cst_9 : f32 to vector<8x1xf32>
    %33 = arith.mulf %32, %18 : vector<8x1xf32>
    %cst_10 = arith.constant -0.808711171 : f32
    %34 = vector.broadcast %cst_10 : f32 to vector<8x1xf32>
    %35 = arith.addf %34, %33 : vector<8x1xf32>
    %36 = arith.subf %35, %31 : vector<8x1xf32>
    %cst_11 = arith.constant 0.000000e+00 : f32
    %37 = vector.broadcast %cst_11 : f32 to vector<8x1xf32>
    %38 = arith.select %10, %36, %37 : vector<8x1xi1>, vector<8x1xf32>
    %c0_12 = arith.constant 0 : index
    %c0_13 = arith.constant 0 : index
    %39 = vector.load %arg3[%c0_12, %c0_13] : memref<8x1xf32, #tpu.memory_space<vmem>>, vector<8x1xf32>
    tpu.vector_store %arg3[%c0_12, %c0_13], %38 {strides = array<i32>} : memref<8x1xf32, #tpu.memory_space<vmem>>, vector<8x1xf32>,
    return
  }
  func.func @transform_0(%arg0: i32) -> (i32, i32) {
    %c0_i32 = arith.constant 0 : i32
    %c0_i32_0 = arith.constant 0 : i32
    return %arg0, %c0_i32 : i32, i32
  }
  func.func @transform_1(%arg0: i32) -> (i32, i32) {
    %c0_i32 = arith.constant 0 : i32
    %c0_i32_0 = arith.constant 0 : i32
    return %arg0, %c0_i32 : i32, i32
  }
  func.func @transform_2(%arg0: i32) -> (i32, i32) {
    %c0_i32 = arith.constant 0 : i32
    %c0_i32_0 = arith.constant 0 : i32
    return %arg0, %c0_i32 : i32, i32
  }
}

</mosaic_0001>

<bundles_post_ra>
// kernel: tpu_custom_call.1
= control target key start
LH: loop header
LB: loop body
LE: loop exit
PB: predicated region body
PF: predicated region fallthrough
CT: control target
= control target key end

     0   :  { %s308_s9 = smov 0   ;;  %s338_s0 = inlined_call_operand.vmem [shape: s32[16,1], index: 0, kind: input, shape index: {}]   ;;  %s339_s1 = inlined_call_operand.vmem [shape: f32[16,128], index: 1, kind: input, shape index: {}]   ;;  %s340_s2 = inlined_call_operand.vmem [shape: f32[16,1], index: 2, kind: output, shape index: {}]  }
   0x1 LB: > { %s314_s10 = sadd.s32 4294967295, %s289_s9   ;;  %p261_p0 = scmp.ge.s32.totalorder %s289_s9, 1  ;;  %s289_s9 = sphi %s308_s9, %s12_s9  }
   0x2   : > { %p120_p1 = scmp.lt.s32.totalorder %s289_s9, 3 }
   0x4   : > { %p121_p2 = pnand %p261_p0, %p120_p1 }
   0x5   : > { %p144_p3 = scmp.lt.s32.totalorder (!%p121_p2), %s314_s10, 1  ;;  %s265_s19 = sshll.u32 (!%p121_p2), %s314_s10, 3 }
   0x6   : > { %124 = sbr.rel (%p121_p2) target bundleno = 276 (0x114), region = 28 }
   0xb   : > { %v291_v0 = vmov 0   ;;  %s145_s11 = scalar_select %p144_p3, %s314_s10, 1  ;;  %v159_v7 = vlaneseq  ;;  %v292_v10 = vmov 0.0007936508   ;;  %v161_v15 = vstv %s265_s19 }
   0xc   : > { %278 = vset.pattern.permute.xlu0 %v291_v0  ;;  %vm190_vm5 = vcmask 7168  }
   0xd   : > { %s320_s12 = sshll.u32 %s145_s11, 3  ;;  %v176_v8 = vand.u32 127, %v159_v7  ;;  %v160_v14 = vshrl.u32 %v159_v7, 7 }
   0xe   : > { %s151_s15 = scalar_lea.vmem %s339_s1, %s320_s12  ;;  %s147_s18 = scalar_lea.vmem %s338_s0, %s320_s12 }
   0xf   : > { %v156_v1 = vld [vmem:[%s151_s15] sm:$0xff]  ;;  %vm182_vm0 = vcmp.eq.s32.totalorder %v176_v8, 0  ;;  %v162_v16 = vadd.s32 %v161_v15, %v160_v14  ;;  %s155_s22 = scalar_lea.vmem %s340_s2, %s320_s12 }
  0x10   : > { %166 = vmax.xlane.f32.xlu0 %v156_v1  ;;  %v157_v2 = vld [vmem:[%s147_s18] sm:$0xff] }
  0x11   : > { %vm164_vm2 = vcmp.ne.s32.totalorder %v157_v2, 0  ;;  %vm163_vm3 = vcmp.lt.s32.totalorder %v162_v16, 16 }
  0x12   : > { %vm165_vm4 = vmand %vm163_vm3, %vm164_vm2 }
  0x24   : > { %178 = vperm.xlu0 %278, %v157_v2  }
  0x83   : > { %v167_v3 = vpop.xlane.xlu0 %166 }
  0x84   : > { %v168_v4 = vsub.f32 %v156_v1, %v167_v3 }
  0x86   : > { %v169_v5 = vmul.f32 1.442695, %v168_v4 }
  0x88   : > { %279 = vpow2.f32 %v169_v5 }
  0x8e   : > { %v280_v6 = vpop.eup %279 }
  0x8f   : > { %171 = vadd.xlane.f32.xlu1 %v280_v6 }
  0x96   : > { %v179_v9 = vpop.permute.xlu0 %178 }
  0x97   : > { %vm180_vm1 = vcmp.eq.s32.totalorder %v176_v8, %v179_v9 }
  0x98   : > { %v181_v11 = vsel %vm180_vm1, 0.9, %v292_v10 }
  0x99   : > { %v183_v12 = vsel %vm182_vm0, 0.0, %v181_v11 }
  0x9a   : > { %v184_v13 = vmul.f32 %v183_v12, %v168_v4 }
  0x9c   : > { %185 = vadd.xlane.f32.xlu1 %v184_v13 }
 0x102   : > { %v172_v17 = vpop.xlane.xlu1 %171 }
 0x103   : > { %281 = vlog2.f32 %v172_v17 }
 0x109   : > { %v282_v18 = vpop.eup %281 }
 0x10a   : > { %v174_v19 = vmul.f32 0.6931472, %v282_v18 }
 0x10c   : > { %v187_v20 = vadd.f32 -0.8087112, %v174_v19 }
 0x10f   : > { %v186_v21 = vpop.xlane.xlu1 %185 }
 0x110   : > { %v188_v22 = vsub.f32 %v187_v20, %v186_v21 }
 0x112   : > { %v189_v23 = vsel %vm165_vm4, %v188_v22, 0.0 }
 0x113   : > { %191 = vst.msk [vmem:[%s155_s22] sm:$0xff] %vm190_vm5, %v189_v23 }
 0x114 PF: > { %s12_s9 = sadd.s32 1, %s289_s9  }
 0x115   : > { %p9_p4 = scmp.ge.s32.totalorder %s12_s9, 4  }
 0x117   :  { %11 = sbr.rel (!%p9_p4) target bundleno = 1 (0x1), region = 61 }

</bundles_post_ra>
